<compile_context>
chip_gen: v6e
topology: v6e:2x2x1
jax: 0.10.0
libtpu: 0.0.40
codegen_flags: <defaults>
</compile_context>

<pallas_src>
import functools

import jax
import jax.numpy as jnp
from jax.experimental import pallas as pl
from jax.experimental.pallas import tpu as pltpu

LN_EPS = 1e-5  # torch LayerNorm default


def _layernorm(x, gamma, beta, inv_d):
    # Single-pass: the two cross-lane reductions are independent, so the XLU can pipeline
    # them instead of serializing mean -> (x-mean)^2 -> var.
    s1 = jnp.sum(x, axis=-1, keepdims=True)
    s2 = jnp.sum(x * x, axis=-1, keepdims=True)
    mean = s1 * inv_d
    var = s2 * inv_d - mean * mean
    return (x - mean) * jax.lax.rsqrt(var + LN_EPS) * gamma + beta


def _transformer_kernel(x_ref, wa_ref, w1_ref, w2_ref, vec_ref, wd_ref, out_ref):
    L = wa_ref.shape[0]
    D = x_ref.shape[1]
    H = w1_ref.shape[2]
    OPAD = wd_ref.shape[1]
    inv_d = 1.0 / D

    x = x_ref[...]

    # Statically unrolled layer loop (L is small): gives the scheduler cross-layer
    # visibility so LayerNorm VPU/XLU work overlaps the next layer's MXU pushes.
    for l in range(L):
        vec = vec_ref[l]                              # (8, P) packed per-layer vectors
        ba = vec[0:1, :D]
        g1 = vec[1:2, :D]
        be1 = vec[2:3, :D]
        bf1 = vec[3:4, :H]
        bf2 = vec[4:5, :D]
        g2 = vec[5:6, :D]
        be2 = vec[6:7, :D]

        # seq_len == 1: attention weights are identically 1, so MHA == out_proj(v_proj(x));
        # wa/ba are the prep-time fused composition of value- and output-projection.
        attn = jnp.dot(x, wa_ref[l], preferred_element_type=jnp.float32) + ba
        x = _layernorm(x + attn, g1, be1, inv_d)

        h = jnp.dot(x, w1_ref[l], preferred_element_type=jnp.float32) + bf1
        h = jnp.maximum(h, 0.0)                       # activation = relu (torch default)
        ff = jnp.dot(h, w2_ref[l], preferred_element_type=jnp.float32) + bf2
        x = _layernorm(x + ff, g2, be2, inv_d)

    # Lane-dense decoder store (output padded to a multiple of 128 columns).
    # The decoder bias lives in the spare 8th row of layer 0's vector slab.
    bd = vec_ref[0, 7:8, :OPAD]
    out_ref[...] = jnp.dot(x, wd_ref[...], preferred_element_type=jnp.float32) + bd


def prepare_params(params, weights_dtype=jnp.float32):
    """One-time (model-load) parameter preparation.  Returns (wa, w1, w2, vecs, wd)."""
    (wv, bv, wo, bo, g1, be1, w1, bf1, w2, bf2, g2, be2, wd, bd) = params
    L, D, _ = wv.shape
    H = w1.shape[-1]
    O = wd.shape[-1]
    assert D % 128 == 0, "d_model must be a multiple of 128 for this kernel"

    HPAD = max(128, ((H + 127) // 128) * 128)   # lane-dense FF hidden dim
    OPAD = ((O + 127) // 128) * 128             # lane-dense decoder width
    P = max(D, HPAD, OPAD)                      # lane width of the packed vector slab

    # seq_len==1 attention fusion:  out_proj(v_proj(x)) = x @ (Wv @ Wo) + (bv @ Wo + bo)
    wa = jnp.einsum('lij,ljk->lik', wv, wo)
    ba = jnp.einsum('lij,ljk->lik', bv, wo) + bo

    # Zero-pad the FF hidden dim to 128 lanes (bit-identical: relu(0)=0, padded w2 rows = 0).
    w1p = jnp.pad(w1, ((0, 0), (0, 0), (0, HPAD - H)))
    w2p = jnp.pad(w2, ((0, 0), (0, HPAD - H), (0, 0)))

    # Pack the 7 tiny per-layer vectors plus the (global) decoder bias into one (L, 8, P) slab.
    def row(v):
        return jnp.pad(v, ((0, 0), (0, 0), (0, P - v.shape[-1])))

    bd_rows = jnp.zeros((L, 1, P), jnp.float32).at[0, 0, :O].set(bd[0])
    vecs = jnp.concatenate(
        [row(ba), row(g1), row(be1), row(bf1), row(bf2), row(g2), row(be2), bd_rows],
        axis=1)                                  # (L, 8, P)

    wd_p = jnp.pad(wd, ((0, 0), (0, OPAD - O)))

    # Optionally cast the big matrices (not the biases/LN params) to bf16 for v6e/v7x.
    wa = wa.astype(weights_dtype)
    w1p = w1p.astype(weights_dtype)
    w2p = w2p.astype(weights_dtype)
    wd_p = wd_p.astype(weights_dtype)

    return (wa, w1p, w2p, vecs.astype(jnp.float32), wd_p)


def transformer_forward(reflectance, prepared, out_size, materials=None):
    # `materials` is accepted (matching the torch forward signature) but unused.
    wa, w1, w2, vecs, wd = prepared
    B, D = reflectance.shape
    L = wa.shape[0]
    H = w1.shape[-1]
    OPAD = wd.shape[-1]

    flops = L * (2 * B * D * D + 2 * B * D * H + 2 * B * H * D) + 2 * B * D * OPAD
    bytes_accessed = (
        4 * reflectance.size + 4 * vecs.size
        + wa.dtype.itemsize * (wa.size + w1.size + w2.size + wd.size)
        + 4 * B * OPAD)
    transcendentals = 2 * L * B  # one rsqrt per row per LayerNorm

    vmem_spec = pl.BlockSpec(memory_space=pltpu.MemorySpace.VMEM)
    out = pl.pallas_call(
        _transformer_kernel,
        out_shape=jax.ShapeDtypeStruct((B, OPAD), jnp.float32),
        in_specs=[vmem_spec] * 5 + [vmem_spec],
        out_specs=vmem_spec,
        cost_estimate=pl.CostEstimate(
            flops=int(flops),
            transcendentals=int(transcendentals),
            bytes_accessed=int(bytes_accessed)),
    )(reflectance, wa, w1, w2, vecs, wd)

    return out[:, :out_size]


def reference_forward(x, params):
    # Pure-JAX reference with the ORIGINAL (unfused, unpadded) parameters; also validates
    # the prep-time attention fusion and FF padding numerically.
    (wv, bv, wo, bo, g1, be1, w1, bf1, w2, bf2, g2, be2, wd, bd) = params

    def ln(x, g, b):
        m = jnp.mean(x, -1, keepdims=True)
        v = jnp.mean((x - m) ** 2, -1, keepdims=True)
        return (x - m) / jnp.sqrt(v + LN_EPS) * g + b

    for l in range(wv.shape[0]):
        attn = (x @ wv[l] + bv[l]) @ wo[l] + bo[l]
        x = ln(x + attn, g1[l], be1[l])
        ff = jnp.maximum(x @ w1[l] + bf1[l], 0.0) @ w2[l] + bf2[l]
        x = ln(x + ff, g2[l], be2[l])
    return x @ wd + bd


if __name__ == "__main__":
    # Small, TPU-friendly shapes consistent with the module:
    #   d_model (input_size) = 128, dim_feedforward = 64, num_layers = 2,
    #   num_heads = 4 (no effect: seq_len == 1), output_size = 12, batch = 16.
    B, D, H, O, L = 16, 128, 64, 12, 2

    key = jax.random.PRNGKey(0)
    ks = jax.random.split(key, 16)
    s = 0.05

    reflectance = jax.random.normal(ks[0], (B, D), jnp.float32)
    materials = jnp.zeros((B,), jnp.int32)  # unused, mirrors torch forward signature

    wv = s * jax.random.normal(ks[1], (L, D, D), jnp.float32)
    bv = s * jax.random.normal(ks[2], (L, 1, D), jnp.float32)
    wo = s * jax.random.normal(ks[3], (L, D, D), jnp.float32)
    bo = s * jax.random.normal(ks[4], (L, 1, D), jnp.float32)
    g1 = 1.0 + 0.1 * jax.random.normal(ks[5], (L, 1, D), jnp.float32)
    be1 = 0.1 * jax.random.normal(ks[6], (L, 1, D), jnp.float32)
    w1 = s * jax.random.normal(ks[7], (L, D, H), jnp.float32)
    bf1 = s * jax.random.normal(ks[8], (L, 1, H), jnp.float32)
    w2 = s * jax.random.normal(ks[9], (L, H, D), jnp.float32)
    bf2 = s * jax.random.normal(ks[10], (L, 1, D), jnp.float32)
    g2 = 1.0 + 0.1 * jax.random.normal(ks[11], (L, 1, D), jnp.float32)
    be2 = 0.1 * jax.random.normal(ks[12], (L, 1, D), jnp.float32)
    wd = s * jax.random.normal(ks[13], (D, O), jnp.float32)
    bd = s * jax.random.normal(ks[14], (1, O), jnp.float32)

    params = (wv, bv, wo, bo, g1, be1, w1, bf1, w2, bf2, g2, be2, wd, bd)

    # One-time, model-load-time parameter prep (f32 weights here so the reference
    # tolerance holds; pass weights_dtype=jnp.bfloat16 on v6e/v7x for smaller DMAs).
    prepared = jax.tree_util.tree_map(jax.block_until_ready, prepare_params(params))

    fwd = jax.jit(functools.partial(transformer_forward, out_size=O))
    out = jax.block_until_ready(fwd(reflectance, prepared))

    ref = reference_forward(reflectance, params)
    assert out.shape == (B, O), out.shape
    err = float(jnp.max(jnp.abs(out - ref)))
    assert jnp.allclose(out, ref, atol=2e-4, rtol=2e-4), err

    print("KERNEL_OK")
</pallas_src>

<mosaic_0001>
module attributes {stable_mosaic.version = 11 : i64} {
  func.func @_transformer_kernel(%arg0: memref<16x128xf32, #tpu.memory_space<vmem>>, %arg1: memref<2x128x128xf32, #tpu.memory_space<vmem>>, %arg2: memref<2x128x128xf32, #tpu.memory_space<vmem>>, %arg3: memref<2x128x128xf32, #tpu.memory_space<vmem>>, %arg4: memref<2x8x128xf32, #tpu.memory_space<vmem>>, %arg5: memref<128x128xf32, #tpu.memory_space<vmem>>, %arg6: memref<16x128xf32, #tpu.memory_space<vmem>>) attributes {dimension_semantics = [], scalar_prefetch = 0 : i64, scratch_operands = 0 : i64, tpu.core_type = #tpu.core_type<tc>} {
    %c0 = arith.constant 0 : index
    %c0_0 = arith.constant 0 : index
    %0 = vector.load %arg0[%c0, %c0_0] : memref<16x128xf32, #tpu.memory_space<vmem>>, vector<16x128xf32>
    %c0_1 = arith.constant 0 : index
    %c0_2 = arith.constant 0 : index
    %c0_3 = arith.constant 0 : index
    %1 = vector.load %arg4[%c0_1, %c0_2, %c0_3] : memref<2x8x128xf32, #tpu.memory_space<vmem>>, vector<1x8x128xf32>
    %2 = vector.shape_cast %1 : vector<1x8x128xf32> to vector<8x128xf32>
    %3 = vector.extract_strided_slice %2 {offsets = [0, 0], sizes = [1, 128], strides = [1, 1]} : vector<8x128xf32> to vector<1x128xf32>
    %4 = vector.extract_strided_slice %2 {offsets = [1, 0], sizes = [1, 128], strides = [1, 1]} : vector<8x128xf32> to vector<1x128xf32>
    %5 = vector.extract_strided_slice %2 {offsets = [2, 0], sizes = [1, 128], strides = [1, 1]} : vector<8x128xf32> to vector<1x128xf32>
    %6 = vector.extract_strided_slice %2 {offsets = [3, 0], sizes = [1, 128], strides = [1, 1]} : vector<8x128xf32> to vector<1x128xf32>
    %7 = vector.extract_strided_slice %2 {offsets = [4, 0], sizes = [1, 128], strides = [1, 1]} : vector<8x128xf32> to vector<1x128xf32>
    %8 = vector.extract_strided_slice %2 {offsets = [5, 0], sizes = [1, 128], strides = [1, 1]} : vector<8x128xf32> to vector<1x128xf32>
    %9 = vector.extract_strided_slice %2 {offsets = [6, 0], sizes = [1, 128], strides = [1, 1]} : vector<8x128xf32> to vector<1x128xf32>
    %c0_4 = arith.constant 0 : index
    %c0_5 = arith.constant 0 : index
    %c0_6 = arith.constant 0 : index
    %10 = vector.load %arg1[%c0_4, %c0_5, %c0_6] : memref<2x128x128xf32, #tpu.memory_space<vmem>>, vector<1x128x128xf32>
    %11 = vector.shape_cast %10 : vector<1x128x128xf32> to vector<128x128xf32>
    %cst = arith.constant dense<0.000000e+00> : vector<16x128xf32>
    %12 = tpu.matmul %0, %11, %cst {dimension_numbers = #tpu.dot_dimension_numbers<[1], [0], [0], [1], [0, 0, 1, 1], [], []>} : vector<16x128xf32>, vector<128x128xf32>, vector<16x128xf32> -> vector<16x128xf32>
    %13 = vector.broadcast %3 : vector<1x128xf32> to vector<16x128xf32>
    %14 = arith.addf %12, %13 : vector<16x128xf32>
    %15 = arith.addf %0, %14 : vector<16x128xf32>
    %cst_7 = arith.constant dense<0.000000e+00> : vector<16xf32>
    %16 = vector.multi_reduction <add>, %15, %cst_7 [1] : vector<16x128xf32> to vector<16xf32>
    %17 = vector.shape_cast %16 : vector<16xf32> to vector<16x1xf32>
    %18 = arith.mulf %15, %15 : vector<16x128xf32>
    %cst_8 = arith.constant dense<0.000000e+00> : vector<16xf32>
    %19 = vector.multi_reduction <add>, %18, %cst_8 [1] : vector<16x128xf32> to vector<16xf32>
    %20 = vector.shape_cast %19 : vector<16xf32> to vector<16x1xf32>
    %cst_9 = arith.constant 7.812500e-03 : f32
    %21 = vector.broadcast %cst_9 : f32 to vector<16x1xf32>
    %22 = arith.mulf %17, %21 : vector<16x1xf32>
    %cst_10 = arith.constant 7.812500e-03 : f32
    %23 = vector.broadcast %cst_10 : f32 to vector<16x1xf32>
    %24 = arith.mulf %20, %23 : vector<16x1xf32>
    %25 = arith.mulf %22, %22 : vector<16x1xf32>
    %26 = arith.subf %24, %25 : vector<16x1xf32>
    %27 = vector.broadcast %22 : vector<16x1xf32> to vector<16x128xf32>
    %28 = arith.subf %15, %27 : vector<16x128xf32>
    %cst_11 = arith.constant 9.99999974E-6 : f32
    %29 = vector.broadcast %cst_11 : f32 to vector<16x1xf32>
    %30 = arith.addf %26, %29 : vector<16x1xf32>
    %31 = math.rsqrt %30 : vector<16x1xf32>
    %32 = vector.broadcast %31 : vector<16x1xf32> to vector<16x128xf32>
    %33 = arith.mulf %28, %32 : vector<16x128xf32>
    %34 = vector.broadcast %4 : vector<1x128xf32> to vector<16x128xf32>
    %35 = arith.mulf %33, %34 : vector<16x128xf32>
    %36 = vector.broadcast %5 : vector<1x128xf32> to vector<16x128xf32>
    %37 = arith.addf %35, %36 : vector<16x128xf32>
    %c0_12 = arith.constant 0 : index
    %c0_13 = arith.constant 0 : index
    %c0_14 = arith.constant 0 : index
    %38 = vector.load %arg2[%c0_12, %c0_13, %c0_14] : memref<2x128x128xf32, #tpu.memory_space<vmem>>, vector<1x128x128xf32>
    %39 = vector.shape_cast %38 : vector<1x128x128xf32> to vector<128x128xf32>
    %cst_15 = arith.constant dense<0.000000e+00> : vector<16x128xf32>
    %40 = tpu.matmul %37, %39, %cst_15 {dimension_numbers = #tpu.dot_dimension_numbers<[1], [0], [0], [1], [0, 0, 1, 1], [], []>} : vector<16x128xf32>, vector<128x128xf32>, vector<16x128xf32> -> vector<16x128xf32>
    %41 = vector.broadcast %6 : vector<1x128xf32> to vector<16x128xf32>
    %42 = arith.addf %40, %41 : vector<16x128xf32>
    %cst_16 = arith.constant 0.000000e+00 : f32
    %43 = vector.broadcast %cst_16 : f32 to vector<16x128xf32>
    %44 = arith.maximumf %42, %43 : vector<16x128xf32>
    %c0_17 = arith.constant 0 : index
    %c0_18 = arith.constant 0 : index
    %c0_19 = arith.constant 0 : index
    %45 = vector.load %arg3[%c0_17, %c0_18, %c0_19] : memref<2x128x128xf32, #tpu.memory_space<vmem>>, vector<1x128x128xf32>
    %46 = vector.shape_cast %45 : vector<1x128x128xf32> to vector<128x128xf32>
    %cst_20 = arith.constant dense<0.000000e+00> : vector<16x128xf32>
    %47 = tpu.matmul %44, %46, %cst_20 {dimension_numbers = #tpu.dot_dimension_numbers<[1], [0], [0], [1], [0, 0, 1, 1], [], []>} : vector<16x128xf32>, vector<128x128xf32>, vector<16x128xf32> -> vector<16x128xf32>
    %48 = vector.broadcast %7 : vector<1x128xf32> to vector<16x128xf32>
    %49 = arith.addf %47, %48 : vector<16x128xf32>
    %50 = arith.addf %37, %49 : vector<16x128xf32>
    %cst_21 = arith.constant dense<0.000000e+00> : vector<16xf32>
    %51 = vector.multi_reduction <add>, %50, %cst_21 [1] : vector<16x128xf32> to vector<16xf32>
    %52 = vector.shape_cast %51 : vector<16xf32> to vector<16x1xf32>
    %53 = arith.mulf %50, %50 : vector<16x128xf32>
    %cst_22 = arith.constant dense<0.000000e+00> : vector<16xf32>
    %54 = vector.multi_reduction <add>, %53, %cst_22 [1] : vector<16x128xf32> to vector<16xf32>
    %55 = vector.shape_cast %54 : vector<16xf32> to vector<16x1xf32>
    %cst_23 = arith.constant 7.812500e-03 : f32
    %56 = vector.broadcast %cst_23 : f32 to vector<16x1xf32>
    %57 = arith.mulf %52, %56 : vector<16x1xf32>
    %cst_24 = arith.constant 7.812500e-03 : f32
    %58 = vector.broadcast %cst_24 : f32 to vector<16x1xf32>
    %59 = arith.mulf %55, %58 : vector<16x1xf32>
    %60 = arith.mulf %57, %57 : vector<16x1xf32>
    %61 = arith.subf %59, %60 : vector<16x1xf32>
    %62 = vector.broadcast %57 : vector<16x1xf32> to vector<16x128xf32>
    %63 = arith.subf %50, %62 : vector<16x128xf32>
    %cst_25 = arith.constant 9.99999974E-6 : f32
    %64 = vector.broadcast %cst_25 : f32 to vector<16x1xf32>
    %65 = arith.addf %61, %64 : vector<16x1xf32>
    %66 = math.rsqrt %65 : vector<16x1xf32>
    %67 = vector.broadcast %66 : vector<16x1xf32> to vector<16x128xf32>
    %68 = arith.mulf %63, %67 : vector<16x128xf32>
    %69 = vector.broadcast %8 : vector<1x128xf32> to vector<16x128xf32>
    %70 = arith.mulf %68, %69 : vector<16x128xf32>
    %71 = vector.broadcast %9 : vector<1x128xf32> to vector<16x128xf32>
    %72 = arith.addf %70, %71 : vector<16x128xf32>
    %c1 = arith.constant 1 : index
    %c0_26 = arith.constant 0 : index
    %c0_27 = arith.constant 0 : index
    %73 = vector.load %arg4[%c1, %c0_26, %c0_27] : memref<2x8x128xf32, #tpu.memory_space<vmem>>, vector<1x8x128xf32>
    %74 = vector.shape_cast %73 : vector<1x8x128xf32> to vector<8x128xf32>
    %75 = vector.extract_strided_slice %74 {offsets = [0, 0], sizes = [1, 128], strides = [1, 1]} : vector<8x128xf32> to vector<1x128xf32>
    %76 = vector.extract_strided_slice %74 {offsets = [1, 0], sizes = [1, 128], strides = [1, 1]} : vector<8x128xf32> to vector<1x128xf32>
    %77 = vector.extract_strided_slice %74 {offsets = [2, 0], sizes = [1, 128], strides = [1, 1]} : vector<8x128xf32> to vector<1x128xf32>
    %78 = vector.extract_strided_slice %74 {offsets = [3, 0], sizes = [1, 128], strides = [1, 1]} : vector<8x128xf32> to vector<1x128xf32>
    %79 = vector.extract_strided_slice %74 {offsets = [4, 0], sizes = [1, 128], strides = [1, 1]} : vector<8x128xf32> to vector<1x128xf32>
    %80 = vector.extract_strided_slice %74 {offsets = [5, 0], sizes = [1, 128], strides = [1, 1]} : vector<8x128xf32> to vector<1x128xf32>
    %81 = vector.extract_strided_slice %74 {offsets = [6, 0], sizes = [1, 128], strides = [1, 1]} : vector<8x128xf32> to vector<1x128xf32>
    %c1_28 = arith.constant 1 : index
    %c0_29 = arith.constant 0 : index
    %c0_30 = arith.constant 0 : index
    %82 = vector.load %arg1[%c1_28, %c0_29, %c0_30] : memref<2x128x128xf32, #tpu.memory_space<vmem>>, vector<1x128x128xf32>
    %83 = vector.shape_cast %82 : vector<1x128x128xf32> to vector<128x128xf32>
    %cst_31 = arith.constant dense<0.000000e+00> : vector<16x128xf32>
    %84 = tpu.matmul %72, %83, %cst_31 {dimension_numbers = #tpu.dot_dimension_numbers<[1], [0], [0], [1], [0, 0, 1, 1], [], []>} : vector<16x128xf32>, vector<128x128xf32>, vector<16x128xf32> -> vector<16x128xf32>
    %85 = vector.broadcast %75 : vector<1x128xf32> to vector<16x128xf32>
    %86 = arith.addf %84, %85 : vector<16x128xf32>
    %87 = arith.addf %72, %86 : vector<16x128xf32>
    %cst_32 = arith.constant dense<0.000000e+00> : vector<16xf32>
    %88 = vector.multi_reduction <add>, %87, %cst_32 [1] : vector<16x128xf32> to vector<16xf32>
    %89 = vector.shape_cast %88 : vector<16xf32> to vector<16x1xf32>
    %90 = arith.mulf %87, %87 : vector<16x128xf32>
    %cst_33 = arith.constant dense<0.000000e+00> : vector<16xf32>
    %91 = vector.multi_reduction <add>, %90, %cst_33 [1] : vector<16x128xf32> to vector<16xf32>
    %92 = vector.shape_cast %91 : vector<16xf32> to vector<16x1xf32>
    %cst_34 = arith.constant 7.812500e-03 : f32
    %93 = vector.broadcast %cst_34 : f32 to vector<16x1xf32>
    %94 = arith.mulf %89, %93 : vector<16x1xf32>
    %cst_35 = arith.constant 7.812500e-03 : f32
    %95 = vector.broadcast %cst_35 : f32 to vector<16x1xf32>
    %96 = arith.mulf %92, %95 : vector<16x1xf32>
    %97 = arith.mulf %94, %94 : vector<16x1xf32>
    %98 = arith.subf %96, %97 : vector<16x1xf32>
    %99 = vector.broadcast %94 : vector<16x1xf32> to vector<16x128xf32>
    %100 = arith.subf %87, %99 : vector<16x128xf32>
    %cst_36 = arith.constant 9.99999974E-6 : f32
    %101 = vector.broadcast %cst_36 : f32 to vector<16x1xf32>
    %102 = arith.addf %98, %101 : vector<16x1xf32>
    %103 = math.rsqrt %102 : vector<16x1xf32>
    %104 = vector.broadcast %103 : vector<16x1xf32> to vector<16x128xf32>
    %105 = arith.mulf %100, %104 : vector<16x128xf32>
    %106 = vector.broadcast %76 : vector<1x128xf32> to vector<16x128xf32>
    %107 = arith.mulf %105, %106 : vector<16x128xf32>
    %108 = vector.broadcast %77 : vector<1x128xf32> to vector<16x128xf32>
    %109 = arith.addf %107, %108 : vector<16x128xf32>
    %c1_37 = arith.constant 1 : index
    %c0_38 = arith.constant 0 : index
    %c0_39 = arith.constant 0 : index
    %110 = vector.load %arg2[%c1_37, %c0_38, %c0_39] : memref<2x128x128xf32, #tpu.memory_space<vmem>>, vector<1x128x128xf32>
    %111 = vector.shape_cast %110 : vector<1x128x128xf32> to vector<128x128xf32>
    %cst_40 = arith.constant dense<0.000000e+00> : vector<16x128xf32>
    %112 = tpu.matmul %109, %111, %cst_40 {dimension_numbers = #tpu.dot_dimension_numbers<[1], [0], [0], [1], [0, 0, 1, 1], [], []>} : vector<16x128xf32>, vector<128x128xf32>, vector<16x128xf32> -> vector<16x128xf32>
    %113 = vector.broadcast %78 : vector<1x128xf32> to vector<16x128xf32>
    %114 = arith.addf %112, %113 : vector<16x128xf32>
    %cst_41 = arith.constant 0.000000e+00 : f32
    %115 = vector.broadcast %cst_41 : f32 to vector<16x128xf32>
    %116 = arith.maximumf %114, %115 : vector<16x128xf32>
    %c1_42 = arith.constant 1 : index
    %c0_43 = arith.constant 0 : index
    %c0_44 = arith.constant 0 : index
    %117 = vector.load %arg3[%c1_42, %c0_43, %c0_44] : memref<2x128x128xf32, #tpu.memory_space<vmem>>, vector<1x128x128xf32>
    %118 = vector.shape_cast %117 : vector<1x128x128xf32> to vector<128x128xf32>
    %cst_45 = arith.constant dense<0.000000e+00> : vector<16x128xf32>
    %119 = tpu.matmul %116, %118, %cst_45 {dimension_numbers = #tpu.dot_dimension_numbers<[1], [0], [0], [1], [0, 0, 1, 1], [], []>} : vector<16x128xf32>, vector<128x128xf32>, vector<16x128xf32> -> vector<16x128xf32>
    %120 = vector.broadcast %79 : vector<1x128xf32> to vector<16x128xf32>
    %121 = arith.addf %119, %120 : vector<16x128xf32>
    %122 = arith.addf %109, %121 : vector<16x128xf32>
    %cst_46 = arith.constant dense<0.000000e+00> : vector<16xf32>
    %123 = vector.multi_reduction <add>, %122, %cst_46 [1] : vector<16x128xf32> to vector<16xf32>
    %124 = vector.shape_cast %123 : vector<16xf32> to vector<16x1xf32>
    %125 = arith.mulf %122, %122 : vector<16x128xf32>
    %cst_47 = arith.constant dense<0.000000e+00> : vector<16xf32>
    %126 = vector.multi_reduction <add>, %125, %cst_47 [1] : vector<16x128xf32> to vector<16xf32>
    %127 = vector.shape_cast %126 : vector<16xf32> to vector<16x1xf32>
    %cst_48 = arith.constant 7.812500e-03 : f32
    %128 = vector.broadcast %cst_48 : f32 to vector<16x1xf32>
    %129 = arith.mulf %124, %128 : vector<16x1xf32>
    %cst_49 = arith.constant 7.812500e-03 : f32
    %130 = vector.broadcast %cst_49 : f32 to vector<16x1xf32>
    %131 = arith.mulf %127, %130 : vector<16x1xf32>
    %132 = arith.mulf %129, %129 : vector<16x1xf32>
    %133 = arith.subf %131, %132 : vector<16x1xf32>
    %134 = vector.broadcast %129 : vector<16x1xf32> to vector<16x128xf32>
    %135 = arith.subf %122, %134 : vector<16x128xf32>
    %cst_50 = arith.constant 9.99999974E-6 : f32
    %136 = vector.broadcast %cst_50 : f32 to vector<16x1xf32>
    %137 = arith.addf %133, %136 : vector<16x1xf32>
    %138 = math.rsqrt %137 : vector<16x1xf32>
    %139 = vector.broadcast %138 : vector<16x1xf32> to vector<16x128xf32>
    %140 = arith.mulf %135, %139 : vector<16x128xf32>
    %141 = vector.broadcast %80 : vector<1x128xf32> to vector<16x128xf32>
    %142 = arith.mulf %140, %141 : vector<16x128xf32>
    %143 = vector.broadcast %81 : vector<1x128xf32> to vector<16x128xf32>
    %144 = arith.addf %142, %143 : vector<16x128xf32>
    %c0_51 = arith.constant 0 : index
    %c7 = arith.constant 7 : index
    %c0_52 = arith.constant 0 : index
    %145 = vector.load %arg4[%c0_51, %c7, %c0_52] : memref<2x8x128xf32, #tpu.memory_space<vmem>>, vector<1x1x128xf32>
    %146 = vector.shape_cast %145 : vector<1x1x128xf32> to vector<1x128xf32>
    %c0_53 = arith.constant 0 : index
    %c0_54 = arith.constant 0 : index
    %147 = vector.load %arg5[%c0_53, %c0_54] : memref<128x128xf32, #tpu.memory_space<vmem>>, vector<128x128xf32>
    %cst_55 = arith.constant dense<0.000000e+00> : vector<16x128xf32>
    %148 = tpu.matmul %144, %147, %cst_55 {dimension_numbers = #tpu.dot_dimension_numbers<[1], [0], [0], [1], [0, 0, 1, 1], [], []>} : vector<16x128xf32>, vector<128x128xf32>, vector<16x128xf32> -> vector<16x128xf32>
    %149 = vector.broadcast %146 : vector<1x128xf32> to vector<16x128xf32>
    %150 = arith.addf %148, %149 : vector<16x128xf32>
    %c0_56 = arith.constant 0 : index
    %c0_57 = arith.constant 0 : index
    %151 = vector.load %arg6[%c0_56, %c0_57] : memref<16x128xf32, #tpu.memory_space<vmem>>, vector<16x128xf32>
    tpu.vector_store %arg6[%c0_56, %c0_57], %150 {strides = array<i32>} : memref<16x128xf32, #tpu.memory_space<vmem>>, vector<16x128xf32>,
    return
  }
}

</mosaic_0001>

<bundles_post_ra>
// kernel: transformer_forward.1
= control target key start
LH: loop header
LB: loop body
LE: loop exit
PB: predicated region body
PF: predicated region fallthrough
CT: control target
= control target key end

     0   :  { %11 = vsyncpa [#allocation3], 0  ;;  %s1702_s0 = inlined_call_operand.hbm [shape: f32[16,128], index: 0, kind: input, shape index: {}]   ;;  %s1703_s1 = inlined_call_operand.hbm [shape: f32[2,128,128], index: 1, kind: input, shape index: {}]   ;;  %s1704_s2 = inlined_call_operand.hbm [shape: f32[2,128,128], index: 2, kind: input, shape index: {}]   ;;  %s1705_s3 = inlined_call_operand.hbm [shape: f32[2,128,128], index: 3, kind: input, shape index: {}]   ;;  %s1706_s4 = inlined_call_operand.hbm [shape: f32[2,8,128], index: 4, kind: input, shape index: {}]   ;;  %s1707_s5 = inlined_call_operand.hbm [shape: f32[128,128], index: 5, kind: input, shape index: {}]   ;;  %s1708_s6 = inlined_call_operand.hbm [shape: f32[16,128], index: 6, kind: output, shape index: {}]  }
   0x1   :  { %12 = vsyncpa [#allocation6], 0 }
   0x2   :  { %13 = vsyncpa [#allocation9], 0 }
   0x3   :  { %14 = vsyncpa [#allocation12], 0 }
   0x4   :  { %15 = vsyncpa [#allocation4], 0  ;;  %s1513_s21 = smov [#allocation5]   ;;  %s1514_s23 = smov [#allocation8]  }
   0x5   :  { %s33_s22 = sshll.u32 %s1513_s21, 4  ;;  %s57_s24 = sshll.u32 %s1514_s23, 4  ;;  %s34_s22 = int_to_ptr.vmem [resolvable:$true] %s33_s22  ;;  %s58_s24 = int_to_ptr.vmem [resolvable:$true] %s57_s24 }
   0x6   :  { %s1371_s25 = scalar_lea.vmem %s34_s22, 4096  ;;  %p1376_p1 = scmp.lt.s32.totalorder %s34_s22, %s34_s22 }
   0x7   :  { %p1372_p0 = scmp.ne.s32.totalorder %s34_s22, %s1371_s25  ;;  %p1377_p2 = scmp.lt.s32.totalorder %s1371_s25, %s1371_s25 }
   0x9   :  { %p1378_p3 = por %p1377_p2, %p1376_p1 }
   0xb   :  { %p1379_p4 = pnand %p1378_p3, %p1372_p0 }
   0xd   :  { %1382 = shalt.err (!%p1379_p4)
}
   0xe   :  { %s1515_s26 = smov 128   ;;  %s1516_s27 = smov 8  }
   0xf   :  { %39 = dma.hbm_to_vmem [thread:$0]  %s1703_s1, 4096, %s34_s22, [#allocation6], %s1515_s26, %s1515_s26, %s1516_s27  }
  0x10   :  { %s1391_s30 = scalar_lea.vmem %s58_s24, 4096  ;;  %p1396_p6 = scmp.lt.s32.totalorder %s58_s24, %s58_s24 }
  0x11   :  { %p1392_p5 = scmp.ne.s32.totalorder %s58_s24, %s1391_s30  ;;  %p1397_p7 = scmp.lt.s32.totalorder %s1391_s30, %s1391_s30 }
  0x13   :  { %p1398_p8 = por %p1397_p7, %p1396_p6 }
  0x15   :  { %p1399_p9 = pnand %p1398_p8, %p1392_p5 }
  0x17   :  { %1402 = shalt.err (!%p1399_p9)
}
  0x18   :  { %63 = dma.hbm_to_vmem [thread:$0]  %s1705_s3, 4096, %s58_s24, [#allocation9], %s1515_s26, %s1515_s26, %s1516_s27  }
  0x19   :  { %s1517_s9 = smov [#allocation2]   ;;  %s1518_s11 = smov [#allocation7]  }
  0x1a   :  { %s21_s10 = sshll.u32 %s1517_s9, 4  ;;  %s45_s12 = sshll.u32 %s1518_s11, 4  ;;  %s22_s10 = int_to_ptr.vmem [resolvable:$true] %s21_s10  ;;  %s46_s12 = int_to_ptr.vmem [resolvable:$true] %s45_s12 }
  0x1b   :  { %s1411_s1 = scalar_lea.vmem %s22_s10, 256  ;;  %p1416_p11 = scmp.lt.s32.totalorder %s22_s10, %s22_s10 }
  0x1c   :  { %p1412_p10 = scmp.ne.s32.totalorder %s22_s10, %s1411_s1  ;;  %p1417_p12 = scmp.lt.s32.totalorder %s1411_s1, %s1411_s1 }
  0x1e   :  { %p1418_p13 = por %p1417_p12, %p1416_p11 }
  0x20   :  { %p1419_p0 = pnand %p1418_p13, %p1412_p10 }
  0x22   :  { %1422 = shalt.err (!%p1419_p0)
}
  0x23   :  { %27 = dma.hbm_to_vmem [thread:$0]  %s1702_s0, 256, %s22_s10, [#allocation3], %s1515_s26, %s1515_s26, %s1516_s27  }
  0x24   :  { %s1431_s3 = scalar_lea.vmem %s46_s12, 4096  ;;  %p1436_p2 = scmp.lt.s32.totalorder %s46_s12, %s46_s12 }
  0x25   :  { %p1432_p1 = scmp.ne.s32.totalorder %s46_s12, %s1431_s3  ;;  %p1437_p3 = scmp.lt.s32.totalorder %s1431_s3, %s1431_s3 }
  0x27   :  { %p1438_p4 = por %p1437_p3, %p1436_p2 }
  0x29   :  { %p1439_p5 = pnand %p1438_p4, %p1432_p1 }
  0x2b   :  { %1442 = shalt.err (!%p1439_p5)
}
  0x2c   :  { %51 = dma.hbm_to_vmem [thread:$0]  %s1704_s2, 4096, %s46_s12, [#allocation6], %s1515_s26, %s1515_s26, %s1516_s27  }
  0x2d   :  { %s1519_s17 = smov [#allocation10]   ;;  %s1520_s19 = smov [#allocation11]  }
  0x2e   :  { %s69_s18 = sshll.u32 %s1519_s17, 4  ;;  %s81_s20 = sshll.u32 %s1520_s19, 4  ;;  %s70_s18 = int_to_ptr.vmem [resolvable:$true] %s69_s18  ;;  %s82_s20 = int_to_ptr.vmem [resolvable:$true] %s81_s20 }
  0x2f   :  { %s1451_s0 = scalar_lea.vmem %s70_s18, 256  ;;  %p1456_p7 = scmp.lt.s32.totalorder %s70_s18, %s70_s18 }
  0x30   :  { %p1452_p6 = scmp.ne.s32.totalorder %s70_s18, %s1451_s0  ;;  %p1457_p8 = scmp.lt.s32.totalorder %s1451_s0, %s1451_s0 }
  0x32   :  { %p1458_p9 = por %p1457_p8, %p1456_p7 }
  0x34   :  { %p1459_p10 = pnand %p1458_p9, %p1452_p6 }
  0x36   :  { %1462 = shalt.err (!%p1459_p10)
}
  0x37   :  { %75 = dma.hbm_to_vmem [thread:$0]  %s1706_s4, 256, %s70_s18, [#allocation9], %s1515_s26, %s1515_s26, %s1516_s27  }
  0x38   :  { %s1471_s2 = scalar_lea.vmem %s82_s20, 2048  ;;  %p1476_p12 = scmp.lt.s32.totalorder %s82_s20, %s82_s20 }
  0x39   :  { %p1472_p11 = scmp.ne.s32.totalorder %s82_s20, %s1471_s2  ;;  %p1477_p13 = scmp.lt.s32.totalorder %s1471_s2, %s1471_s2 }
  0x3b   :  { %p1478_p0 = por %p1477_p13, %p1476_p12 }
  0x3d   :  { %p1479_p1 = pnand %p1478_p0, %p1472_p11 }
  0x3f   :  { %1482 = shalt.err (!%p1479_p1)
}
  0x40   :  { %87 = dma.hbm_to_vmem [thread:$0]  %s1707_s5, 2048, %s82_s20, [#allocation12], %s1515_s26, %s1515_s26, %s1516_s27  }
  0x41   :  { %1503 = dma.done.wait [#allocation3], 256  }
  0x42   :  { %1504 = vsyncadd [#allocation3], 4294967040 }
  0x43   :  { %1505 = dma.done.wait [#allocation6], 8192  }
  0x44   :  { %1506 = vsyncadd [#allocation6], 4294959104 }
  0x45   :  { %1507 = dma.done.wait [#allocation9], 4352  }
  0x46   :  { %1508 = vsyncadd [#allocation9], 4294962944 }
  0x47   :  { %1509 = dma.done.wait [#allocation12], 2048  }
  0x48   :  { %1510 = vsyncadd [#allocation12], 4294965248  ;;  %v124_v0 = vld [vmem:[#allocation5 + $0x78] sm:$0xff]  ;;  %v123_v1 = vld [vmem:[#allocation5 + $0x70] sm:$0xff]  ;;  %v125_v18 = vlaneseq  ;;  %s1521_s4 = smov [#allocation13]  }
  0x49   :  { %1093 = vmatprep.subr.mxu0 %v124_v0  ;;  %v122_v2 = vld [vmem:[#allocation5 + $0x68] sm:$0xff]  ;;  %v121_v3 = vld [vmem:[#allocation5 + $0x60] sm:$0xff]  ;;  %v106_v4 = vld [vmem:[#allocation2] sm:$0xff]  ;;  %s951_s5 = sshll.u32 %s1521_s4, 4  ;;  %s952_s5 = int_to_ptr.vmem [resolvable:$true] %s951_s5 }
  0x4a   :  { %1094 = vmatpush3.msra.mxu0 %v124_v0  ;;  %v120_v5 = vld [vmem:[#allocation5 + $0x58] sm:$0xff]  ;;  %1125 = vmatprep.mubr.f32.mxu0 %v106_v4  ;;  %v119_v6 = vld [vmem:[#allocation5 + $0x50] sm:$0xff]  ;;  %v118_v7 = vld [vmem:[#allocation5 + $0x48] sm:$0xff]  ;;  %v1593_v19 = vshrl.u32 %v125_v18, 7  ;;  %s1483_s25 = scalar_lea.vmem %s952_s5, 256  ;;  %p1488_p3 = scmp.lt.s32.totalorder %s952_s5, %s952_s5 }
  0x4b   :  { %1095 = vmatprep.subr.mxu0 %v123_v1  ;;  %v117_v8 = vld [vmem:[#allocation5 + $0x40] sm:$0xff]  ;;  %v116_v9 = vld [vmem:[#allocation5 + $0x38] sm:$0xff]  ;;  %v115_v10 = vld [vmem:[#allocation5 + $0x30] sm:$0xff]  ;;  %p1484_p2 = scmp.ne.s32.totalorder %s952_s5, %s1483_s25  ;;  %p1489_p4 = scmp.lt.s32.totalorder %s1483_s25, %s1483_s25 }
  0x4c   :  { %1096 = vmatpush3.msra.mxu0 %v123_v1  ;;  %v114_v11 = vld [vmem:[#allocation5 + $0x28] sm:$0xff]  ;;  %v113_v12 = vld [vmem:[#allocation5 + $0x20] sm:$0xff]  ;;  %v112_v13 = vld [vmem:[#allocation5 + $0x18] sm:$0xff]  ;;  %v127_v20 = vsub.s32 0, %v1593_v19 }
  0x4d   :  { %1097 = vmatprep.subr.mxu0 %v122_v2  ;;  %v111_v14 = vld [vmem:[#allocation5 + $0x10] sm:$0xff]  ;;  %v110_v15 = vld [vmem:[#allocation5 + $0x8] sm:$0xff]  ;;  %v109_v16 = vld [vmem:[#allocation5] sm:$0xff]  ;;  %p1490_p5 = por %p1489_p4, %p1488_p3 }
  0x4e   :  { %1098 = vmatpush3.msra.mxu0 %v122_v2  ;;  %v107_v17 = vld [vmem:[#allocation2 + $0x8] sm:$0xff]  ;;  %v1596_v21 = vld [vmem:[#allocation10] sm:$0xff]  ;;  %v258_v32 = vld [vmem:[#allocation7 + $0x70] sm:$0xff] }
  0x4f   :  { %1099 = vmatprep.subr.mxu0 %v121_v3  ;;  %v128_v22 = vrot.slane %v1596_v21, %v127_v20  ;;  %v259_v31 = vld [vmem:[#allocation7 + $0x78] sm:$0xff]  ;;  %v257_v33 = vld [vmem:[#allocation7 + $0x68] sm:$0xff]  ;;  %v256_v34 = vld [vmem:[#allocation7 + $0x60] sm:$0xff]  ;;  %p1491_p6 = pnand %p1490_p5, %p1484_p2 }
  0x50   :  { %1100 = vmatpush3.msra.mxu0 %v121_v3  ;;  %1128 = vmatprep.subr.mxu1 %v259_v31  ;;  %v255_v35 = vld [vmem:[#allocation7 + $0x58] sm:$0xff]  ;;  %v254_v36 = vld [vmem:[#allocation7 + $0x50] sm:$0xff]  ;;  %v253_v37 = vld [vmem:[#allocation7 + $0x48] sm:$0xff] }
  0x51   :  { %1101 = vmatprep.subr.mxu0 %v120_v5  ;;  %1129 = vmatpush3.msra.mxu1 %v259_v31  ;;  %v252_v38 = vld [vmem:[#allocation7 + $0x40] sm:$0xff]  ;;  %v251_v39 = vld [vmem:[#allocation7 + $0x38] sm:$0xff]  ;;  %v250_v40 = vld [vmem:[#allocation7 + $0x30] sm:$0xff] }
  0x52   :  { %1102 = vmatpush3.msra.mxu0 %v120_v5  ;;  %1130 = vmatprep.subr.mxu1 %v258_v32  ;;  %v249_v41 = vld [vmem:[#allocation7 + $0x28] sm:$0xff]  ;;  %v248_v42 = vld [vmem:[#allocation7 + $0x20] sm:$0xff]  ;;  %v247_v43 = vld [vmem:[#allocation7 + $0x18] sm:$0xff] }
  0x53   :  { %1103 = vmatprep.subr.mxu0 %v119_v6  ;;  %1131 = vmatpush3.msra.mxu1 %v258_v32  ;;  %v246_v44 = vld [vmem:[#allocation7 + $0x10] sm:$0xff]  ;;  %v245_v45 = vld [vmem:[#allocation7 + $0x8] sm:$0xff]  ;;  %v244_v46 = vld [vmem:[#allocation7] sm:$0xff] }
  0x54   :  { %1104 = vmatpush3.msra.mxu0 %v119_v6  ;;  %1132 = vmatprep.subr.mxu1 %v257_v33  ;;  %v356_v47 = vld [vmem:[#allocation8 + $0x78] sm:$0xff]  ;;  %v355_v48 = vld [vmem:[#allocation8 + $0x70] sm:$0xff]  ;;  %v354_v49 = vld [vmem:[#allocation8 + $0x68] sm:$0xff] }
  0x55   :  { %1105 = vmatprep.subr.mxu0 %v118_v7  ;;  %1133 = vmatpush3.msra.mxu1 %v257_v33  ;;  %v353_v50 = vld [vmem:[#allocation8 + $0x60] sm:$0xff]  ;;  %v352_v51 = vld [vmem:[#allocation8 + $0x58] sm:$0xff]  ;;  %v351_v52 = vld [vmem:[#allocation8 + $0x50] sm:$0xff] }
  0x56   :  { %1106 = vmatpush3.msra.mxu0 %v118_v7  ;;  %1134 = vmatprep.subr.mxu1 %v256_v34  ;;  %v350_v53 = vld [vmem:[#allocation8 + $0x48] sm:$0xff]  ;;  %v349_v54 = vld [vmem:[#allocation8 + $0x40] sm:$0xff]  ;;  %v348_v55 = vld [vmem:[#allocation8 + $0x38] sm:$0xff] }
  0x57   :  { %1107 = vmatprep.subr.mxu0 %v117_v8  ;;  %1135 = vmatpush3.msra.mxu1 %v256_v34  ;;  %v347_v56 = vld [vmem:[#allocation8 + $0x30] sm:$0xff]  ;;  %v346_v57 = vld [vmem:[#allocation8 + $0x28] sm:$0xff]  ;;  %v345_v58 = vld [vmem:[#allocation8 + $0x20] sm:$0xff] }
  0x58   :  { %1108 = vmatpush3.msra.mxu0 %v117_v8  ;;  %1136 = vmatprep.subr.mxu1 %v255_v35 }
  0x59   :  { %1109 = vmatprep.subr.mxu0 %v116_v9  ;;  %1137 = vmatpush3.msra.mxu1 %v255_v35 }
  0x5a   :  { %1110 = vmatpush3.msra.mxu0 %v116_v9  ;;  %1138 = vmatprep.subr.mxu1 %v254_v36  ;;  %v234_v9 = vsub.s32 1, %v1593_v19 }
  0x5b   :  { %1111 = vmatprep.subr.mxu0 %v115_v10  ;;  %1139 = vmatpush3.msra.mxu1 %v254_v36 }
  0x5c   :  { %1112 = vmatpush3.msra.mxu0 %v115_v10  ;;  %1140 = vmatprep.subr.mxu1 %v253_v37  ;;  %v240_v10 = vsub.s32 2, %v1593_v19 }
  0x5d   :  { %1113 = vmatprep.subr.mxu0 %v114_v11  ;;  %1141 = vmatpush3.msra.mxu1 %v253_v37 }
  0x5e   :  { %1114 = vmatpush3.msra.mxu0 %v114_v11  ;;  %1142 = vmatprep.subr.mxu1 %v252_v38 }
  0x5f   :  { %1115 = vmatprep.subr.mxu0 %v113_v12  ;;  %1143 = vmatpush3.msra.mxu1 %v252_v38  ;;  %v359_v38 = vsub.s32 4, %v1593_v19 }
  0x60   :  { %1116 = vmatpush3.msra.mxu0 %v113_v12  ;;  %1144 = vmatprep.subr.mxu1 %v251_v39  ;;  %v235_v12 = vrot.slane %v1596_v21, %v234_v9 }
  0x61   :  { %1117 = vmatprep.subr.mxu0 %v112_v13  ;;  %1145 = vmatpush3.msra.mxu1 %v251_v39  ;;  %v360_v39 = vrot.slane %v1596_v21, %v359_v38 }
  0x62   :  { %1118 = vmatpush3.msra.mxu0 %v112_v13  ;;  %1146 = vmatprep.subr.mxu1 %v250_v40 }
  0x63   :  { %1119 = vmatprep.subr.mxu0 %v111_v14  ;;  %1147 = vmatpush3.msra.mxu1 %v250_v40 }
  0x64   :  { %1120 = vmatpush3.msra.mxu0 %v111_v14  ;;  %1148 = vmatprep.subr.mxu1 %v249_v41 }
  0x65   :  { %1121 = vmatprep.subr.mxu0 %v110_v15  ;;  %1149 = vmatpush3.msra.mxu1 %v249_v41 }
  0x66   :  { %1122 = vmatpush3.msra.mxu0 %v110_v15  ;;  %1150 = vmatprep.subr.mxu1 %v248_v42  ;;  %v241_v15 = vrot.slane %v1596_v21, %v240_v10 }
  0x67   :  { %1123 = vmatprep.subr.mxu0 %v109_v16  ;;  %1151 = vmatpush3.msra.mxu1 %v248_v42 }
  0x68   :  { %1124 = vmatpush3.msra.mxu0 %v109_v16  ;;  %1152 = vmatprep.subr.mxu1 %v247_v43 }
  0x69   :  { %1126 = vmatmul.mubr.f32.vlgmr.msra.gmra.mxu0 %v107_v17  ;;  %1153 = vmatpush3.msra.mxu1 %v247_v43 }
  0x6a   :  { %1154 = vmatprep.subr.mxu1 %v246_v44  ;;  %1163 = vmatprep.subr.mxu0 %v356_v47 }
  0x6b   :  { %1155 = vmatpush3.msra.mxu1 %v246_v44  ;;  %1164 = vmatpush3.msra.mxu0 %v356_v47 }
  0x6c   :  { %1156 = vmatprep.subr.mxu1 %v245_v45  ;;  %1165 = vmatprep.subr.mxu0 %v355_v48 }
  0x6d   :  { %1157 = vmatpush3.msra.mxu1 %v245_v45  ;;  %1166 = vmatpush3.msra.mxu0 %v355_v48  ;;  %v494_v48 = vld [vmem:[#allocation5 + $0xf8] sm:$0xff] }
  0x6e   :  { %1158 = vmatprep.subr.mxu1 %v244_v46  ;;  %1167 = vmatprep.subr.mxu0 %v354_v49 }
  0x6f   :  { %1159 = vmatpush3.msra.mxu1 %v244_v46  ;;  %1168 = vmatpush3.msra.mxu0 %v354_v49  ;;  %v493_v49 = vld [vmem:[#allocation5 + $0xf0] sm:$0xff] }
  0x70   :  { %1169 = vmatprep.subr.mxu0 %v353_v50  ;;  %1198 = vmatprep.subr.mxu1 %v494_v48 }
  0x71   :  { %1170 = vmatpush3.msra.mxu0 %v353_v50  ;;  %v492_v50 = vld [vmem:[#allocation5 + $0xe8] sm:$0xff] }
  0x72   :  { %1171 = vmatprep.subr.mxu0 %v352_v51 }
  0x73   :  { %1172 = vmatpush3.msra.mxu0 %v352_v51  ;;  %v491_v51 = vld [vmem:[#allocation5 + $0xe0] sm:$0xff] }
  0x74   :  { %1173 = vmatprep.subr.mxu0 %v351_v52 }
  0x75   :  { %1174 = vmatpush3.msra.mxu0 %v351_v52  ;;  %v490_v52 = vld [vmem:[#allocation5 + $0xd8] sm:$0xff] }
  0x76   :  { %1175 = vmatprep.subr.mxu0 %v350_v53 }
  0x77   :  { %1176 = vmatpush3.msra.mxu0 %v350_v53  ;;  %v489_v53 = vld [vmem:[#allocation5 + $0xd0] sm:$0xff] }
  0x78   :  { %1177 = vmatprep.subr.mxu0 %v349_v54 }
  0x79   :  { %1178 = vmatpush3.msra.mxu0 %v349_v54  ;;  %v488_v54 = vld [vmem:[#allocation5 + $0xc8] sm:$0xff] }
  0x7a   :  { %1179 = vmatprep.subr.mxu0 %v348_v55 }
  0x7b   :  { %1180 = vmatpush3.msra.mxu0 %v348_v55  ;;  %v487_v55 = vld [vmem:[#allocation5 + $0xc0] sm:$0xff] }
  0x7c   :  { %1181 = vmatprep.subr.mxu0 %v347_v56 }
  0x7d   :  { %1182 = vmatpush3.msra.mxu0 %v347_v56  ;;  %v486_v56 = vld [vmem:[#allocation5 + $0xb8] sm:$0xff] }
  0x7e   :  { %1183 = vmatprep.subr.mxu0 %v346_v57 }
  0x7f   :  { %1184 = vmatpush3.msra.mxu0 %v346_v57  ;;  %v485_v57 = vld [vmem:[#allocation5 + $0xb0] sm:$0xff] }
  0x80   :  { %1185 = vmatprep.subr.mxu0 %v345_v58 }
  0x81   :  { %1186 = vmatpush3.msra.mxu0 %v345_v58  ;;  %v484_v58 = vld [vmem:[#allocation5 + $0xa8] sm:$0xff] }
 0x129   :  { %v1127_v23 = vpop.f32.mrf.mxu0 }
 0x12a   :  { %v201_v25 = vadd.f32 %v1127_v23, %v128_v22 }
 0x12b   :  { %v195_v24 = vpop.f32.mrf.mxu0 }
 0x12c   :  { %v196_v26 = vadd.f32 %v195_v24, %v128_v22  ;;  %v1603_v28 = vadd.f32 %v201_v25, %v107_v17 }
 0x12e   :  { %v1601_v27 = vadd.f32 %v196_v26, %v106_v4  ;;  %v211_v30 = vmul.f32 %v1603_v28, %v1603_v28  ;;  %v344_v26 = vld [vmem:[#allocation8 + $0x18] sm:$0xff] }
 0x12f   :  { %1187 = vmatprep.subr.mxu0 %v344_v26 }
 0x130   :  { %206 = vadd.xlane.f32.xlu0 %v1601_v27  ;;  %v210_v29 = vmul.f32 %v1601_v27, %v1601_v27  ;;  %1188 = vmatpush3.msra.mxu0 %v344_v26 }
 0x132   :  { %212 = vadd.xlane.f32.xlu1 %v210_v29  ;;  %v342_v29 = vld [vmem:[#allocation8 + $0x8] sm:$0xff] }
 0x134   :  { %208 = vadd.xlane.f32.xlu0 %v1603_v28 }
 0x136   :  { %214 = vadd.xlane.f32.xlu1 %v211_v30  ;;  %v341_v30 = vld [vmem:[#allocation8] sm:$0xff] }
 0x1b9   :  { %v207_v59 = vpop.xlane.xlu0 %206 }
 0x1ba   :  { %v216_v60 = vmul.f32 0.0078125, %v207_v59  ;;  %v483_v59 = vld [vmem:[#allocation5 + $0xa0] sm:$0xff] }
 0x1bb   :  { %v213_v61 = vpop.xlane.xlu1 %212 }
 0x1bc   :  { %v220_v62 = vmul.f32 %v216_v60, %v216_v60  ;;  %v218_v63 = vmul.f32 0.0078125, %v213_v61  ;;  %v224_v11 = vsub.f32 %v1601_v27, %v216_v60  ;;  %v343_v27 = vld [vmem:[#allocation8 + $0x10] sm:$0xff]  ;;  %v482_v60 = vld [vmem:[#allocation5 + $0x98] sm:$0xff] }
 0x1bd   :  { %v209_v0 = vpop.xlane.xlu0 %208  ;;  %1189 = vmatprep.subr.mxu0 %v343_v27  ;;  %v481_v61 = vld [vmem:[#allocation5 + $0x90] sm:$0xff] }
 0x1be   :  { %v222_v1 = vsub.f32 %v218_v63, %v220_v62  ;;  %v217_v2 = vmul.f32 0.0078125, %v209_v0  ;;  %1190 = vmatpush3.msra.mxu0 %v343_v27  ;;  %v480_v62 = vld [vmem:[#allocation5 + $0x88] sm:$0xff]  ;;  %v479_v63 = vld [vmem:[#allocation5 + $0x80] sm:$0xff] }
 0x1bf   :  { %v215_v3 = vpop.xlane.xlu1 %214  ;;  %1191 = vmatprep.subr.mxu0 %v342_v29 }
 0x1c0   :  { %v226_v4 = vadd.f32 1e-05, %v222_v1  ;;  %v221_v5 = vmul.f32 %v217_v2, %v217_v2  ;;  %v219_v6 = vmul.f32 0.0078125, %v215_v3  ;;  %v225_v16 = vsub.f32 %v1603_v28, %v217_v2  ;;  %1192 = vmatpush3.msra.mxu0 %v342_v29 }
 0x1c1   :  { %1193 = vmatprep.subr.mxu0 %v341_v30  ;;  %v262_v28 = vsub.s32 3, %v1593_v19 }
 0x1c2   :  { %1347 = vrsqrt.f32 %v226_v4  ;;  %v223_v7 = vsub.f32 %v219_v6, %v221_v5  ;;  %1194 = vmatpush3.msra.mxu0 %v341_v30 }
 0x1c3   :  { %v263_v31 = vrot.slane %v1596_v21, %v262_v28 }
 0x1c4   :  { %v227_v8 = vadd.f32 1e-05, %v223_v7 }
 0x1c6   :  { %1349 = vrsqrt.f32 %v227_v8 }
 0x1cf   :  { %v1348_v13 = vpop.eup %1347 }
 0x1d0   :  { %v230_v14 = vmul.f32 %v1348_v13, %v224_v11 }
 0x1d2   :  { %v236_v17 = vmul.f32 %v235_v12, %v230_v14 }
 0x1d3   :  { %v1350_v18 = vpop.eup %1349 }
 0x1d4   :  { %v242_v22 = vadd.f32 %v241_v15, %v236_v17  ;;  %v231_v23 = vmul.f32 %v1350_v18, %v225_v16  ;;  %v466_v16 = vsub.s32 5, %v1593_v19 }
 0x1d6   :  { %1160 = vmatprep.mubr.f32.mxu1 %v242_v22  ;;  %v237_v24 = vmul.f32 %v235_v12, %v231_v23  ;;  %v472_v23 = vsub.s32 6, %v1593_v19 }
 0x1d8   :  { %v243_v25 = vadd.f32 %v241_v15, %v237_v24  ;;  %v473_v29 = vrot.slane %v1596_v21, %v472_v23 }
 0x1da   :  { %1161 = vmatmul.mubr.f32.vlgmr.msra.gmra.mxu1 %v243_v25 }
 0x1db   :  { %1199 = vmatpush3.msra.mxu1 %v494_v48  ;;  %v625_v48 = vld [vmem:[#allocation7 + $0xd0] sm:$0xff] }
 0x1dc   :  { %1200 = vmatprep.subr.mxu1 %v493_v49 }
 0x1dd   :  { %1201 = vmatpush3.msra.mxu1 %v493_v49  ;;  %v624_v49 = vld [vmem:[#allocation7 + $0xc8] sm:$0xff] }
 0x1de   :  { %1202 = vmatprep.subr.mxu1 %v492_v50 }
 0x1df   :  { %1203 = vmatpush3.msra.mxu1 %v492_v50  ;;  %v623_v50 = vld [vmem:[#allocation7 + $0xc0] sm:$0xff] }
 0x1e0   :  { %1204 = vmatprep.subr.mxu1 %v491_v51 }
 0x1e1   :  { %1205 = vmatpush3.msra.mxu1 %v491_v51  ;;  %v622_v51 = vld [vmem:[#allocation7 + $0xb8] sm:$0xff] }
 0x1e2   :  { %1206 = vmatprep.subr.mxu1 %v490_v52 }
 0x1e3   :  { %1207 = vmatpush3.msra.mxu1 %v490_v52  ;;  %v621_v52 = vld [vmem:[#allocation7 + $0xb0] sm:$0xff] }
 0x1e4   :  { %1208 = vmatprep.subr.mxu1 %v489_v53 }
 0x1e5   :  { %1209 = vmatpush3.msra.mxu1 %v489_v53  ;;  %v620_v53 = vld [vmem:[#allocation7 + $0xa8] sm:$0xff] }
 0x1e6   :  { %1210 = vmatprep.subr.mxu1 %v488_v54 }
 0x1e7   :  { %1211 = vmatpush3.msra.mxu1 %v488_v54  ;;  %v619_v54 = vld [vmem:[#allocation7 + $0xa0] sm:$0xff] }
 0x1e8   :  { %1212 = vmatprep.subr.mxu1 %v487_v55 }
 0x1e9   :  { %1213 = vmatpush3.msra.mxu1 %v487_v55  ;;  %v618_v55 = vld [vmem:[#allocation7 + $0x98] sm:$0xff] }
 0x1ea   :  { %1214 = vmatprep.subr.mxu1 %v486_v56 }
 0x1eb   :  { %1215 = vmatpush3.msra.mxu1 %v486_v56  ;;  %v617_v56 = vld [vmem:[#allocation7 + $0x90] sm:$0xff] }
 0x1ec   :  { %1216 = vmatprep.subr.mxu1 %v485_v57 }
 0x1ed   :  { %1217 = vmatpush3.msra.mxu1 %v485_v57  ;;  %v616_v57 = vld [vmem:[#allocation7 + $0x88] sm:$0xff] }
 0x1ee   :  { %1218 = vmatprep.subr.mxu1 %v484_v58 }
 0x1ef   :  { %1219 = vmatpush3.msra.mxu1 %v484_v58  ;;  %v615_v58 = vld [vmem:[#allocation7 + $0x80] sm:$0xff] }
 0x1f0   :  { %1220 = vmatprep.subr.mxu1 %v483_v59 }
 0x1f1   :  { %1221 = vmatpush3.msra.mxu1 %v483_v59  ;;  %v728_v59 = vld [vmem:[#allocation8 + $0xf8] sm:$0xff] }
 0x1f2   :  { %1222 = vmatprep.subr.mxu1 %v482_v60 }
 0x1f3   :  { %1223 = vmatpush3.msra.mxu1 %v482_v60  ;;  %v727_v60 = vld [vmem:[#allocation8 + $0xf0] sm:$0xff] }
 0x1f4   :  { %1224 = vmatprep.subr.mxu1 %v481_v61 }
 0x1f5   :  { %1225 = vmatpush3.msra.mxu1 %v481_v61  ;;  %v726_v61 = vld [vmem:[#allocation8 + $0xe8] sm:$0xff] }
 0x1f6   :  { %1226 = vmatprep.subr.mxu1 %v480_v62 }
 0x1f7   :  { %1227 = vmatpush3.msra.mxu1 %v480_v62  ;;  %v725_v62 = vld [vmem:[#allocation8 + $0xe0] sm:$0xff] }
 0x1f8   :  { %1228 = vmatprep.subr.mxu1 %v479_v63 }
 0x1f9   :  { %1229 = vmatpush3.msra.mxu1 %v479_v63  ;;  %v724_v63 = vld [vmem:[#allocation8 + $0xd8] sm:$0xff] }
 0x1fa   :  { %1268 = vmatprep.subr.mxu1 %v728_v59 }
 0x29a   :  { %v1162_v32 = vpop.f32.mrf.mxu1 }
 0x29b   :  { %v336_v33 = vadd.f32 %v1162_v32, %v263_v31 }
 0x29c   :  { %v330_v34 = vpop.f32.mrf.mxu1 }
 0x29d   :  { %v331_v35 = vadd.f32 %v330_v34, %v263_v31  ;;  %v340_v37 = vmax.f32 %v336_v33, 0.0  ;;  %v1649_v34 = vld [vmem:[#allocation10 + $0x8] sm:$0xff] }
 0x29f   :  { %v339_v36 = vmax.f32 %v331_v35, 0.0  ;;  %v498_v35 = vrot.slane %v1649_v34, %v127_v20  ;;  %v630_v20 = vld [vmem:[#allocation7 + $0xf8] sm:$0xff] }
 0x2a0   :  { %1233 = vmatprep.subr.mxu0 %v630_v20 }
 0x2a1   :  { %1195 = vmatprep.mubr.f32.mxu0 %v339_v36 }
 0x2a2   :  { %1196 = vmatmul.mubr.f32.vlgmr.msra.gmra.mxu0 %v340_v37 }
 0x2a3   :  { %1234 = vmatpush3.msra.mxu0 %v630_v20  ;;  %v715_v20 = vld [vmem:[#allocation8 + $0x90] sm:$0xff] }
 0x362   :  { %v1197_v40 = vpop.f32.mrf.mxu0 }
 0x363   :  { %v433_v41 = vadd.f32 %v1197_v40, %v360_v39 }
 0x364   :  { %v427_v42 = vpop.f32.mrf.mxu0 }
 0x365   :  { %v1629_v43 = vadd.f32 %v433_v41, %v243_v25  ;;  %v428_v44 = vadd.f32 %v427_v42, %v360_v39 }
 0x367   :  { %v1631_v45 = vadd.f32 %v428_v44, %v242_v22  ;;  %440 = vadd.xlane.f32.xlu1 %v1629_v43  ;;  %v443_v46 = vmul.f32 %v1629_v43, %v1629_v43  ;;  %v467_v22 = vrot.slane %v1596_v21, %v466_v16  ;;  %v629_v44 = vld [vmem:[#allocation7 + $0xf0] sm:$0xff] }
 0x368   :  { %1235 = vmatprep.subr.mxu0 %v629_v44 }
 0x369   :  { %438 = vadd.xlane.f32.xlu0 %v1631_v45  ;;  %v442_v47 = vmul.f32 %v1631_v45, %v1631_v45  ;;  %1236 = vmatpush3.msra.mxu0 %v629_v44 }
 0x36b   :  { %446 = vadd.xlane.f32.xlu1 %v443_v46  ;;  %v627_v46 = vld [vmem:[#allocation7 + $0xe0] sm:$0xff] }
 0x36d   :  { %444 = vadd.xlane.f32.xlu0 %v442_v47  ;;  %v626_v47 = vld [vmem:[#allocation7 + $0xd8] sm:$0xff] }
 0x3f0   :  { %v441_v0 = vpop.xlane.xlu1 %440 }
 0x3f1   :  { %v449_v1 = vmul.f32 0.0078125, %v441_v0  ;;  %v723_v0 = vld [vmem:[#allocation8 + $0xd0] sm:$0xff] }
 0x3f2   :  { %v439_v2 = vpop.xlane.xlu0 %438 }
 0x3f3   :  { %v448_v3 = vmul.f32 0.0078125, %v439_v2  ;;  %v453_v5 = vmul.f32 %v449_v1, %v449_v1  ;;  %v457_v17 = vsub.f32 %v1629_v43, %v449_v1  ;;  %v722_v1 = vld [vmem:[#allocation8 + $0xc8] sm:$0xff]  ;;  %v721_v2 = vld [vmem:[#allocation8 + $0xc0] sm:$0xff] }
 0x3f4   :  { %v447_v4 = vpop.xlane.xlu1 %446 }
 0x3f5   :  { %v451_v6 = vmul.f32 0.0078125, %v447_v4  ;;  %v452_v8 = vmul.f32 %v448_v3, %v448_v3  ;;  %v456_v24 = vsub.f32 %v1631_v45, %v448_v3  ;;  %v628_v45 = vld [vmem:[#allocation7 + $0xe8] sm:$0xff]  ;;  %v720_v3 = vld [vmem:[#allocation8 + $0xb8] sm:$0xff]  ;;  %v719_v4 = vld [vmem:[#allocation8 + $0xb0] sm:$0xff] }
 0x3f6   :  { %v445_v7 = vpop.xlane.xlu0 %444  ;;  %1237 = vmatprep.subr.mxu0 %v628_v45 }
 0x3f7   :  { %v455_v11 = vsub.f32 %v451_v6, %v453_v5  ;;  %v450_v12 = vmul.f32 0.0078125, %v445_v7  ;;  %1238 = vmatpush3.msra.mxu0 %v628_v45  ;;  %v718_v5 = vld [vmem:[#allocation8 + $0xa8] sm:$0xff]  ;;  %v717_v6 = vld [vmem:[#allocation8 + $0xa0] sm:$0xff] }
 0x3f8   :  { %1239 = vmatprep.subr.mxu0 %v627_v46 }
 0x3f9   :  { %v459_v13 = vadd.f32 1e-05, %v455_v11  ;;  %v454_v14 = vsub.f32 %v450_v12, %v452_v8  ;;  %1240 = vmatpush3.msra.mxu0 %v627_v46 }
 0x3fa   :  { %1241 = vmatprep.subr.mxu0 %v626_v47 }
 0x3fb   :  { %1351 = vrsqrt.f32 %v459_v13  ;;  %v458_v15 = vadd.f32 1e-05, %v454_v14  ;;  %1242 = vmatpush3.msra.mxu0 %v626_v47 }
 0x3fc   :  { %1243 = vmatprep.subr.mxu0 %v625_v48 }
 0x3fd   :  { %1353 = vrsqrt.f32 %v458_v15  ;;  %1244 = vmatpush3.msra.mxu0 %v625_v48 }
 0x3fe   :  { %1245 = vmatprep.subr.mxu0 %v624_v49 }
 0x3ff   :  { %1246 = vmatpush3.msra.mxu0 %v624_v49 }
 0x400   :  { %1247 = vmatprep.subr.mxu0 %v623_v50 }
 0x401   :  { %1248 = vmatpush3.msra.mxu0 %v623_v50  ;;  %v732_v50 = vrot.slane %v1649_v34, %v359_v38  ;;  %v864_v38 = vld [vmem:[#allocation11 + $0x78] sm:$0xff] }
 0x402   :  { %1249 = vmatprep.subr.mxu0 %v622_v51 }
 0x403   :  { %1250 = vmatpush3.msra.mxu0 %v622_v51 }
 0x404   :  { %1251 = vmatprep.subr.mxu0 %v621_v52 }
 0x405   :  { %1252 = vmatpush3.msra.mxu0 %v621_v52 }
 0x406   :  { %1253 = vmatprep.subr.mxu0 %v620_v53 }
 0x407   :  { %1254 = vmatpush3.msra.mxu0 %v620_v53 }
 0x408   :  { %v1352_v18 = vpop.eup %1351  ;;  %1255 = vmatprep.subr.mxu0 %v619_v54 }
 0x409   :  { %v463_v25 = vmul.f32 %v1352_v18, %v457_v17  ;;  %1256 = vmatpush3.msra.mxu0 %v619_v54 }
 0x40a   :  { %v1354_v26 = vpop.eup %1353  ;;  %1257 = vmatprep.subr.mxu0 %v618_v55 }
 0x40b   :  { %v462_v27 = vmul.f32 %v1354_v26, %v456_v24  ;;  %v469_v30 = vmul.f32 %v467_v22, %v463_v25  ;;  %1258 = vmatpush3.msra.mxu0 %v618_v55 }
 0x40c   :  { %1259 = vmatprep.subr.mxu0 %v617_v56 }
 0x40d   :  { %v468_v31 = vmul.f32 %v467_v22, %v462_v27  ;;  %v475_v33 = vadd.f32 %v473_v29, %v469_v30  ;;  %1260 = vmatpush3.msra.mxu0 %v617_v56 }
 0x40e   :  { %1261 = vmatprep.subr.mxu0 %v616_v57 }
 0x40f   :  { %v474_v32 = vadd.f32 %v473_v29, %v468_v31  ;;  %1262 = vmatpush3.msra.mxu0 %v616_v57  ;;  %v605_v31 = vrot.slane %v1649_v34, %v234_v9  ;;  %v714_v9 = vld [vmem:[#allocation8 + $0x88] sm:$0xff] }
 0x410   :  { %1263 = vmatprep.subr.mxu0 %v615_v58 }
 0x411   :  { %1230 = vmatprep.mubr.f32.mxu1 %v474_v32  ;;  %1264 = vmatpush3.msra.mxu0 %v615_v58  ;;  %v863_v58 = vld [vmem:[#allocation11 + $0x70] sm:$0xff] }
 0x412   :  { %1231 = vmatmul.mubr.f32.vlgmr.msra.gmra.mxu1 %v475_v33  ;;  %1303 = vmatprep.subr.mxu0 %v864_v38 }
 0x413   :  { %1269 = vmatpush3.msra.mxu1 %v728_v59  ;;  %v862_v59 = vld [vmem:[#allocation11 + $0x68] sm:$0xff] }
 0x414   :  { %1270 = vmatprep.subr.mxu1 %v727_v60 }
 0x415   :  { %1271 = vmatpush3.msra.mxu1 %v727_v60  ;;  %v861_v60 = vld [vmem:[#allocation11 + $0x60] sm:$0xff] }
 0x416   :  { %1272 = vmatprep.subr.mxu1 %v726_v61 }
 0x417   :  { %1273 = vmatpush3.msra.mxu1 %v726_v61  ;;  %v860_v61 = vld [vmem:[#allocation11 + $0x58] sm:$0xff] }
 0x418   :  { %1274 = vmatprep.subr.mxu1 %v725_v62 }
 0x419   :  { %1275 = vmatpush3.msra.mxu1 %v725_v62  ;;  %v859_v62 = vld [vmem:[#allocation11 + $0x50] sm:$0xff] }
 0x41a   :  { %1276 = vmatprep.subr.mxu1 %v724_v63 }
 0x41b   :  { %1277 = vmatpush3.msra.mxu1 %v724_v63  ;;  %v858_v63 = vld [vmem:[#allocation11 + $0x48] sm:$0xff] }
 0x41c   :  { %1278 = vmatprep.subr.mxu1 %v723_v0 }
 0x41d   :  { %1279 = vmatpush3.msra.mxu1 %v723_v0  ;;  %v857_v0 = vld [vmem:[#allocation11 + $0x40] sm:$0xff] }
 0x41e   :  { %1280 = vmatprep.subr.mxu1 %v722_v1 }
 0x41f   :  { %1281 = vmatpush3.msra.mxu1 %v722_v1  ;;  %v856_v1 = vld [vmem:[#allocation11 + $0x38] sm:$0xff] }
 0x420   :  { %1282 = vmatprep.subr.mxu1 %v721_v2 }
 0x421   :  { %1283 = vmatpush3.msra.mxu1 %v721_v2  ;;  %v855_v2 = vld [vmem:[#allocation11 + $0x30] sm:$0xff] }
 0x422   :  { %1284 = vmatprep.subr.mxu1 %v720_v3 }
 0x423   :  { %1285 = vmatpush3.msra.mxu1 %v720_v3  ;;  %v854_v3 = vld [vmem:[#allocation11 + $0x28] sm:$0xff] }
 0x424   :  { %1286 = vmatprep.subr.mxu1 %v719_v4 }
 0x425   :  { %1287 = vmatpush3.msra.mxu1 %v719_v4  ;;  %v853_v4 = vld [vmem:[#allocation11 + $0x20] sm:$0xff] }
 0x426   :  { %1288 = vmatprep.subr.mxu1 %v718_v5 }
 0x427   :  { %1289 = vmatpush3.msra.mxu1 %v718_v5  ;;  %v852_v5 = vld [vmem:[#allocation11 + $0x18] sm:$0xff] }
 0x428   :  { %1290 = vmatprep.subr.mxu1 %v717_v6 }
 0x429   :  { %1291 = vmatpush3.msra.mxu1 %v717_v6  ;;  %v851_v6 = vld [vmem:[#allocation11 + $0x10] sm:$0xff] }
 0x4d2   :  { %v1232_v36 = vpop.f32.mrf.mxu1 }
 0x4d3   :  { %v571_v37 = vadd.f32 %v1232_v36, %v498_v35 }
 0x4d4   :  { %v565_v39 = vpop.f32.mrf.mxu1 }
 0x4d5   :  { %v1654_v40 = vadd.f32 %v571_v37, %v475_v33  ;;  %v566_v41 = vadd.f32 %v565_v39, %v498_v35  ;;  %v611_v37 = vrot.slane %v1649_v34, %v240_v10  ;;  %v634_v10 = vrot.slane %v1649_v34, %v262_v28 }
 0x4d7   :  { %v1656_v42 = vadd.f32 %v566_v41, %v474_v32  ;;  %578 = vadd.xlane.f32.xlu1 %v1654_v40  ;;  %v581_v21 = vmul.f32 %v1654_v40, %v1654_v40 }
 0x4d9   :  { %576 = vadd.xlane.f32.xlu0 %v1656_v42  ;;  %v580_v43 = vmul.f32 %v1656_v42, %v1656_v42 }
 0x4db   :  { %584 = vadd.xlane.f32.xlu1 %v581_v21 }
 0x4dd   :  { %582 = vadd.xlane.f32.xlu0 %v580_v43 }
 0x560   :  { %v579_v7 = vpop.xlane.xlu1 %578 }
 0x561   :  { %v587_v8 = vmul.f32 0.0078125, %v579_v7  ;;  %v850_v7 = vld [vmem:[#allocation11 + $0x8] sm:$0xff] }
 0x562   :  { %v577_v11 = vpop.xlane.xlu0 %576 }
 0x563   :  { %v586_v12 = vmul.f32 0.0078125, %v577_v11  ;;  %v591_v14 = vmul.f32 %v587_v8, %v587_v8  ;;  %v595_v29 = vsub.f32 %v1654_v40, %v587_v8  ;;  %v716_v40 = vld [vmem:[#allocation8 + $0x98] sm:$0xff]  ;;  %v849_v8 = vld [vmem:[#allocation11] sm:$0xff] }
 0x564   :  { %v585_v13 = vpop.xlane.xlu1 %584  ;;  %1292 = vmatprep.subr.mxu1 %v716_v40 }
 0x565   :  { %v589_v15 = vmul.f32 0.0078125, %v585_v13  ;;  %v590_v18 = vmul.f32 %v586_v12, %v586_v12  ;;  %v594_v32 = vsub.f32 %v1656_v42, %v586_v12  ;;  %1293 = vmatpush3.msra.mxu1 %v716_v40  ;;  %v713_v42 = vld [vmem:[#allocation8 + $0x80] sm:$0xff] }
 0x566   :  { %v583_v17 = vpop.xlane.xlu0 %582  ;;  %1294 = vmatprep.subr.mxu1 %v715_v20 }
 0x567   :  { %v593_v22 = vsub.f32 %v589_v15, %v591_v14  ;;  %v588_v24 = vmul.f32 0.0078125, %v583_v17  ;;  %1295 = vmatpush3.msra.mxu1 %v715_v20 }
 0x568   :  { %1296 = vmatprep.subr.mxu1 %v714_v9 }
 0x569   :  { %v597_v25 = vadd.f32 1e-05, %v593_v22  ;;  %v592_v26 = vsub.f32 %v588_v24, %v590_v18  ;;  %1297 = vmatpush3.msra.mxu1 %v714_v9  ;;  %v966_v9 = vld [vmem:[#allocation10 + $0x7] ss:$0 sm:$0xff] }
 0x56a   :  { %1298 = vmatprep.subr.mxu1 %v713_v42 }
 0x56b   :  { %1355 = vrsqrt.f32 %v597_v25  ;;  %v596_v27 = vadd.f32 1e-05, %v592_v26  ;;  %1299 = vmatpush3.msra.mxu1 %v713_v42 }
 0x56d   :  { %1357 = vrsqrt.f32 %v596_v27 }
 0x578   :  { %v1356_v30 = vpop.eup %1355 }
 0x579   :  { %v601_v33 = vmul.f32 %v1356_v30, %v595_v29 }
 0x57a   :  { %v1358_v35 = vpop.eup %1357 }
 0x57b   :  { %v600_v36 = vmul.f32 %v1358_v35, %v594_v32  ;;  %v607_v39 = vmul.f32 %v605_v31, %v601_v33  ;;  %v839_v33 = vrot.slane %v1649_v34, %v466_v16 }
 0x57d   :  { %v606_v41 = vmul.f32 %v605_v31, %v600_v36  ;;  %v613_v43 = vadd.f32 %v611_v37, %v607_v39 }
 0x57f   :  { %v612_v21 = vadd.f32 %v611_v37, %v606_v41  ;;  %v845_v41 = vrot.slane %v1649_v34, %v472_v23 }
 0x581   :  { %1265 = vmatprep.mubr.f32.mxu0 %v612_v21 }
 0x582   :  { %1266 = vmatmul.mubr.f32.vlgmr.msra.gmra.mxu0 %v613_v43 }
 0x583   :  { %1304 = vmatpush3.msra.mxu0 %v864_v38 }
 0x584   :  { %1305 = vmatprep.subr.mxu0 %v863_v58 }
 0x585   :  { %1306 = vmatpush3.msra.mxu0 %v863_v58 }
 0x586   :  { %1307 = vmatprep.subr.mxu0 %v862_v59 }
 0x587   :  { %1308 = vmatpush3.msra.mxu0 %v862_v59 }
 0x588   :  { %1309 = vmatprep.subr.mxu0 %v861_v60 }
 0x589   :  { %1310 = vmatpush3.msra.mxu0 %v861_v60 }
 0x58a   :  { %1311 = vmatprep.subr.mxu0 %v860_v61 }
 0x58b   :  { %1312 = vmatpush3.msra.mxu0 %v860_v61 }
 0x58c   :  { %1313 = vmatprep.subr.mxu0 %v859_v62 }
 0x58d   :  { %1314 = vmatpush3.msra.mxu0 %v859_v62 }
 0x58e   :  { %1315 = vmatprep.subr.mxu0 %v858_v63 }
 0x58f   :  { %1316 = vmatpush3.msra.mxu0 %v858_v63 }
 0x590   :  { %1317 = vmatprep.subr.mxu0 %v857_v0 }
 0x591   :  { %1318 = vmatpush3.msra.mxu0 %v857_v0 }
 0x592   :  { %1319 = vmatprep.subr.mxu0 %v856_v1 }
 0x593   :  { %1320 = vmatpush3.msra.mxu0 %v856_v1 }
 0x594   :  { %1321 = vmatprep.subr.mxu0 %v855_v2 }
 0x595   :  { %1322 = vmatpush3.msra.mxu0 %v855_v2 }
 0x596   :  { %1323 = vmatprep.subr.mxu0 %v854_v3 }
 0x597   :  { %1324 = vmatpush3.msra.mxu0 %v854_v3 }
 0x598   :  { %1325 = vmatprep.subr.mxu0 %v853_v4 }
 0x599   :  { %1326 = vmatpush3.msra.mxu0 %v853_v4 }
 0x59a   :  { %1327 = vmatprep.subr.mxu0 %v852_v5 }
 0x59b   :  { %1328 = vmatpush3.msra.mxu0 %v852_v5 }
 0x59c   :  { %1329 = vmatprep.subr.mxu0 %v851_v6 }
 0x59d   :  { %1330 = vmatpush3.msra.mxu0 %v851_v6 }
 0x59e   :  { %1331 = vmatprep.subr.mxu0 %v850_v7 }
 0x59f   :  { %1332 = vmatpush3.msra.mxu0 %v850_v7 }
 0x5a0   :  { %1333 = vmatprep.subr.mxu0 %v849_v8 }
 0x5a1   :  { %1334 = vmatpush3.msra.mxu0 %v849_v8 }
 0x642   :  { %v1267_v44 = vpop.f32.mrf.mxu0 }
 0x643   :  { %v707_v45 = vadd.f32 %v1267_v44, %v634_v10 }
 0x644   :  { %v701_v46 = vpop.f32.mrf.mxu0 }
 0x645   :  { %v702_v47 = vadd.f32 %v701_v46, %v634_v10  ;;  %v711_v49 = vmax.f32 %v707_v45, 0.0 }
 0x647   :  { %v710_v48 = vmax.f32 %v702_v47, 0.0 }
 0x649   :  { %1300 = vmatprep.mubr.f32.mxu1 %v710_v48 }
 0x64a   :  { %1301 = vmatmul.mubr.f32.vlgmr.msra.gmra.mxu1 %v711_v49 }
 0x70a   :  { %v1302_v51 = vpop.f32.mrf.mxu1 }
 0x70b   :  { %v805_v52 = vadd.f32 %v1302_v51, %v732_v50 }
 0x70c   :  { %v799_v53 = vpop.f32.mrf.mxu1 }
 0x70d   :  { %v1678_v54 = vadd.f32 %v805_v52, %v613_v43  ;;  %v800_v55 = vadd.f32 %v799_v53, %v732_v50 }
 0x70f   :  { %v1680_v56 = vadd.f32 %v800_v55, %v612_v21  ;;  %812 = vadd.xlane.f32.xlu1 %v1678_v54  ;;  %v815_v28 = vmul.f32 %v1678_v54, %v1678_v54 }
 0x711   :  { %810 = vadd.xlane.f32.xlu0 %v1680_v56  ;;  %v814_v57 = vmul.f32 %v1680_v56, %v1680_v56 }
 0x713   :  { %818 = vadd.xlane.f32.xlu1 %v815_v28 }
 0x715   :  { %816 = vadd.xlane.f32.xlu0 %v814_v57 }
 0x798   :  { %v813_v11 = vpop.xlane.xlu1 %812 }
 0x799   :  { %v821_v12 = vmul.f32 0.0078125, %v813_v11 }
 0x79a   :  { %v811_v13 = vpop.xlane.xlu0 %810 }
 0x79b   :  { %v820_v14 = vmul.f32 0.0078125, %v811_v13  ;;  %v825_v17 = vmul.f32 %v821_v12, %v821_v12  ;;  %v829_v31 = vsub.f32 %v1678_v54, %v821_v12 }
 0x79c   :  { %v819_v15 = vpop.xlane.xlu1 %818 }
 0x79d   :  { %v823_v18 = vmul.f32 0.0078125, %v819_v15  ;;  %v824_v24 = vmul.f32 %v820_v14, %v820_v14  ;;  %v828_v35 = vsub.f32 %v1680_v56, %v820_v14 }
 0x79e   :  { %v817_v22 = vpop.xlane.xlu0 %816 }
 0x79f   :  { %v827_v25 = vsub.f32 %v823_v18, %v825_v17  ;;  %v822_v26 = vmul.f32 0.0078125, %v817_v22 }
 0x7a1   :  { %v831_v27 = vadd.f32 1e-05, %v827_v25  ;;  %v826_v29 = vsub.f32 %v822_v26, %v824_v24 }
 0x7a3   :  { %1359 = vrsqrt.f32 %v831_v27  ;;  %v830_v30 = vadd.f32 1e-05, %v826_v29 }
 0x7a5   :  { %1361 = vrsqrt.f32 %v830_v30 }
 0x7b0   :  { %v1360_v32 = vpop.eup %1359 }
 0x7b1   :  { %v835_v36 = vmul.f32 %v1360_v32, %v829_v31 }
 0x7b2   :  { %v1362_v37 = vpop.eup %1361 }
 0x7b3   :  { %v834_v39 = vmul.f32 %v1362_v37, %v828_v35  ;;  %v841_v21 = vmul.f32 %v839_v33, %v835_v36 }
 0x7b5   :  { %v840_v43 = vmul.f32 %v839_v33, %v834_v39  ;;  %v847_v20 = vadd.f32 %v845_v41, %v841_v21 }
 0x7b7   :  { %v846_v40 = vadd.f32 %v845_v41, %v840_v43 }
 0x7b9   :  { %1335 = vmatprep.mubr.f32.mxu0 %v846_v40 }
 0x7ba   :  { %1336 = vmatmul.mubr.f32.vlgmr.msra.gmra.mxu0 %v847_v20 }
 0x87a   :  { %v1337_v42 = vpop.f32.mrf.mxu0 }
 0x87b   :  { %v941_v16 = vadd.f32 %v1337_v42, %v966_v9 }
 0x87c   :  { %v935_v10 = vpop.f32.mrf.mxu0 }
 0x87d   :  { %945 = vst [vmem:[#allocation13 + $0x8] sm:$0xff] %v941_v16  ;;  %v936_v44 = vadd.f32 %v966_v9, %v935_v10 }
 0x87f   :  { %944 = vst [vmem:[#allocation13] sm:$0xff] %v936_v44 }
 0x880   :  { %1494 = shalt.err (!%p1491_p6)
}
 0x881   :  { %957 = dma.vmem_to_hbm [thread:$0]  %s952_s5, 256, %s1708_s6, [#allocation4], %s1515_s26, %s1515_s26, %s1516_s27  }
 0x882   :  { %1511 = dma.done.wait [#allocation4], 256  }
 0x883   :  { %1512 = vsyncadd [#allocation4], 4294967040 }
 0x884   :  { %961 = vsyncpa [#allocation3], 1 }
 0x885   :  { %962 = vsyncpa [#allocation6], 1 }
 0x886   :  { %963 = vsyncpa [#allocation9], 1 }
 0x887   :  { %964 = vsyncpa [#allocation12], 1 }
 0x888   :  { %965 = vsyncpa [#allocation4], 1 }

</bundles_post_ra>
